<compile_context>
chip_gen: v7x
topology: tpu7x:2x2x1
jax: 0.10.0
libtpu: 0.0.40
codegen_flags: <defaults>
</compile_context>

<pallas_src>
import jax
import jax.numpy as jnp
from jax.experimental import pallas as pl
from jax.experimental.pallas import tpu as pltpu

D_IN = 768
D_HID = 128


def _round_up(x, m):
    return ((x + m - 1) // m) * m


def dumnet_kernel(x_ref, w1_ref, b1_ref, w2_ref, b2_ref, o_ref):
    # x_ref:  (tm, 768)   w1_ref: (768, 128)  b1_ref: (1, 128)   [f32]
    # w2_ref: (128, 768)  b2_ref: (1, 768)    [f32]   o_ref: (tm, 768)
    x = x_ref[...]
    h = jnp.dot(x, w1_ref[...], preferred_element_type=jnp.float32)
    h = jnp.maximum(h + b1_ref[...], 0.0)          # bias + ReLU in f32 (VPU-friendly on v5e)
    h = h.astype(w2_ref.dtype)                      # bf16 MXU path when io_dtype=bf16 (no-op for f32)
    y = jnp.dot(h, w2_ref[...], preferred_element_type=jnp.float32) + b2_ref[...]
    o_ref[...] = y.astype(o_ref.dtype)


def dumnet_forward(x, w1, b1, w2, b2, *, tm=512, io_dtype=None, out_dtype=None):
    """Fused fc1 -> ReLU -> fc2.

    x:  [B, 768]; w1: [768, 128] (== PyTorch fc1.weight.T); b1: [1, 128]
    w2: [128, 768] (== fc2.weight.T); b2: [1, 768]
    io_dtype: storage/DMA dtype for x/w1/w2/out (e.g. jnp.bfloat16). Default: x.dtype.
    """
    B, D = x.shape
    assert D == D_IN
    io_dtype = x.dtype if io_dtype is None else io_dtype
    out_dtype = io_dtype if out_dtype is None else out_dtype

    # Sublane multiple for the I/O dtype (bf16 packs 2 rows / sublane -> min 16).
    sub = 16 if io_dtype == jnp.bfloat16 else 8

    # Tile the batch: biggest tile up to `tm`, rounded to the sublane multiple.
    tm_eff = max(sub, min(_round_up(tm, sub), _round_up(B, sub)))
    n_tiles = pl.cdiv(B, tm_eff)
    if n_tiles == 1 and B >= 2 * sub:
        # Split into at least 2 grid steps so both v7x TensorCores get work.
        tm_eff = _round_up(pl.cdiv(B, 2), sub)
        n_tiles = pl.cdiv(B, tm_eff)
    B_pad = n_tiles * tm_eff

    # Cast + pad inputs (padding rows are zeros; their outputs are discarded).
    x_io = x.astype(io_dtype)
    if B_pad != B:
        x_io = jnp.pad(x_io, ((0, B_pad - B), (0, 0)))
    w1_io = w1.astype(io_dtype)
    w2_io = w2.astype(io_dtype)
    b1_f32 = b1.astype(jnp.float32)
    b2_f32 = b2.astype(jnp.float32)

    out = pl.pallas_call(
        dumnet_kernel,
        out_shape=jax.ShapeDtypeStruct((B_pad, D_IN), out_dtype),
        grid_spec=pltpu.PrefetchScalarGridSpec(
            num_scalar_prefetch=0,
            grid=(n_tiles,),
            in_specs=[
                pl.BlockSpec((tm_eff, D_IN), lambda i: (i, 0)),    # x tile (streamed)
                pl.BlockSpec((D_IN, D_HID), lambda i: (0, 0)),     # W1 (resident)
                pl.BlockSpec((1, D_HID), lambda i: (0, 0)),        # b1 (resident, f32)
                pl.BlockSpec((D_HID, D_IN), lambda i: (0, 0)),     # W2 (resident)
                pl.BlockSpec((1, D_IN), lambda i: (0, 0)),         # b2 (resident, f32)
            ],
            out_specs=pl.BlockSpec((tm_eff, D_IN), lambda i: (i, 0)),
        ),
        compiler_params=pltpu.CompilerParams(
            dimension_semantics=("parallel",),
            vmem_limit_bytes=48 * 1024 * 1024,
        ),
    )(x_io, w1_io, b1_f32, w2_io, b2_f32)

    if B_pad != B:
        out = out[:B]
    return out


def init_params(key):
    # Deterministic init mimicking nn.Linear's uniform(-1/sqrt(fan_in), 1/sqrt(fan_in)).
    k1, k2, k3, k4 = jax.random.split(key, 4)
    bound1 = 1.0 / jnp.sqrt(jnp.float32(D_IN))
    bound2 = 1.0 / jnp.sqrt(jnp.float32(D_HID))
    # Stored as (in, out) == PyTorch weight.T
    w1 = jax.random.uniform(k1, (D_IN, D_HID), jnp.float32, -bound1, bound1)
    b1 = jax.random.uniform(k2, (1, D_HID), jnp.float32, -bound1, bound1)
    w2 = jax.random.uniform(k3, (D_HID, D_IN), jnp.float32, -bound2, bound2)
    b2 = jax.random.uniform(k4, (1, D_IN), jnp.float32, -bound2, bound2)
    return w1, b1, w2, b2


if __name__ == "__main__":
    key = jax.random.PRNGKey(0)
    kx, kp = jax.random.split(key)
    B = 24  # deliberately not a multiple of 8/16 -> exercises padding + multi-tile path
    x = jax.random.normal(kx, (B, D_IN), jnp.float32)
    w1, b1, w2, b2 = init_params(kp)

    # --- f32 I/O path ---
    out_f32 = jax.block_until_ready(dumnet_forward(x, w1, b1, w2, b2))
    ref_f32 = jnp.maximum(x @ w1 + b1, 0.0) @ w2 + b2
    assert out_f32.shape == (B, D_IN)
    assert jnp.allclose(out_f32, ref_f32, atol=1e-4, rtol=1e-4)

    # --- bf16 I/O path (halves HBM traffic; f32 accumulation inside the kernel) ---
    out_bf16 = jax.block_until_ready(
        dumnet_forward(x, w1, b1, w2, b2, io_dtype=jnp.bfloat16)
    )
    assert out_bf16.shape == (B, D_IN) and out_bf16.dtype == jnp.bfloat16
    xb = x.astype(jnp.bfloat16).astype(jnp.float32)
    w1b = w1.astype(jnp.bfloat16).astype(jnp.float32)
    w2b = w2.astype(jnp.bfloat16).astype(jnp.float32)
    hb = jnp.maximum(xb @ w1b + b1, 0.0).astype(jnp.bfloat16).astype(jnp.float32)
    ref_bf16 = hb @ w2b + b2
    assert jnp.allclose(out_bf16.astype(jnp.float32), ref_bf16, atol=3e-2, rtol=3e-2)

    print("KERNEL_OK")
</pallas_src>

<mosaic_0001>
module attributes {stable_mosaic.version = 11 : i64} {
  func.func @dumnet_kernel(%arg0: i32, %arg1: memref<16x768xf32, #tpu.memory_space<vmem>>, %arg2: memref<768x128xf32, #tpu.memory_space<vmem>>, %arg3: memref<1x128xf32, #tpu.memory_space<vmem>>, %arg4: memref<128x768xf32, #tpu.memory_space<vmem>>, %arg5: memref<1x768xf32, #tpu.memory_space<vmem>>, %arg6: memref<16x768xf32, #tpu.memory_space<vmem>>) attributes {dimension_semantics = [#tpu.dimension_semantics<parallel>], iteration_bounds = array<i64: 2>, scalar_prefetch = 0 : i64, scratch_operands = 0 : i64, tpu.core_type = #tpu.core_type<tc>, window_params = [{transform_indices = @transform_0, window_bounds = array<i64: 16, 768>}, {pipeline_mode = #tpu.pipeline_mode<synchronous>, transform_indices = @transform_1, window_bounds = array<i64: 768, 128>}, {pipeline_mode = #tpu.pipeline_mode<synchronous>, transform_indices = @transform_2, window_bounds = array<i64: 1, 128>}, {pipeline_mode = #tpu.pipeline_mode<synchronous>, transform_indices = @transform_3, window_bounds = array<i64: 128, 768>}, {pipeline_mode = #tpu.pipeline_mode<synchronous>, transform_indices = @transform_4, window_bounds = array<i64: 1, 768>}, {transform_indices = @transform_5, window_bounds = array<i64: 16, 768>}]} {
    %c0 = arith.constant 0 : index
    %c0_0 = arith.constant 0 : index
    %0 = vector.load %arg1[%c0, %c0_0] : memref<16x768xf32, #tpu.memory_space<vmem>>, vector<16x768xf32>
    %c0_1 = arith.constant 0 : index
    %c0_2 = arith.constant 0 : index
    %1 = vector.load %arg2[%c0_1, %c0_2] : memref<768x128xf32, #tpu.memory_space<vmem>>, vector<768x128xf32>
    %cst = arith.constant dense<0.000000e+00> : vector<16x128xf32>
    %2 = tpu.matmul %0, %1, %cst {dimension_numbers = #tpu.dot_dimension_numbers<[1], [0], [0], [1], [0, 0, 1, 1], [], []>} : vector<16x768xf32>, vector<768x128xf32>, vector<16x128xf32> -> vector<16x128xf32>
    %c0_3 = arith.constant 0 : index
    %c0_4 = arith.constant 0 : index
    %3 = vector.load %arg3[%c0_3, %c0_4] : memref<1x128xf32, #tpu.memory_space<vmem>>, vector<1x128xf32>
    %4 = vector.broadcast %3 : vector<1x128xf32> to vector<16x128xf32>
    %5 = arith.addf %2, %4 : vector<16x128xf32>
    %cst_5 = arith.constant 0.000000e+00 : f32
    %6 = vector.broadcast %cst_5 : f32 to vector<16x128xf32>
    %7 = arith.maximumf %5, %6 : vector<16x128xf32>
    %c0_6 = arith.constant 0 : index
    %c0_7 = arith.constant 0 : index
    %8 = vector.load %arg4[%c0_6, %c0_7] : memref<128x768xf32, #tpu.memory_space<vmem>>, vector<128x768xf32>
    %cst_8 = arith.constant dense<0.000000e+00> : vector<16x768xf32>
    %9 = tpu.matmul %7, %8, %cst_8 {dimension_numbers = #tpu.dot_dimension_numbers<[1], [0], [0], [1], [0, 0, 1, 1], [], []>} : vector<16x128xf32>, vector<128x768xf32>, vector<16x768xf32> -> vector<16x768xf32>
    %c0_9 = arith.constant 0 : index
    %c0_10 = arith.constant 0 : index
    %10 = vector.load %arg5[%c0_9, %c0_10] : memref<1x768xf32, #tpu.memory_space<vmem>>, vector<1x768xf32>
    %11 = vector.broadcast %10 : vector<1x768xf32> to vector<16x768xf32>
    %12 = arith.addf %9, %11 : vector<16x768xf32>
    %c0_11 = arith.constant 0 : index
    %c0_12 = arith.constant 0 : index
    %13 = vector.load %arg6[%c0_11, %c0_12] : memref<16x768xf32, #tpu.memory_space<vmem>>, vector<16x768xf32>
    tpu.vector_store %arg6[%c0_11, %c0_12], %12 {strides = array<i32>} : memref<16x768xf32, #tpu.memory_space<vmem>>, vector<16x768xf32>,
    return
  }
  func.func @transform_0(%arg0: i32) -> (i32, i32) {
    %c0_i32 = arith.constant 0 : i32
    %c0_i32_0 = arith.constant 0 : i32
    return %arg0, %c0_i32 : i32, i32
  }
  func.func @transform_1(%arg0: i32) -> (i32, i32) {
    %c0_i32 = arith.constant 0 : i32
    %c0_i32_0 = arith.constant 0 : i32
    %c0_i32_1 = arith.constant 0 : i32
    return %c0_i32, %c0_i32_0 : i32, i32
  }
  func.func @transform_2(%arg0: i32) -> (i32, i32) {
    %c0_i32 = arith.constant 0 : i32
    %c0_i32_0 = arith.constant 0 : i32
    %c0_i32_1 = arith.constant 0 : i32
    return %c0_i32, %c0_i32_0 : i32, i32
  }
  func.func @transform_3(%arg0: i32) -> (i32, i32) {
    %c0_i32 = arith.constant 0 : i32
    %c0_i32_0 = arith.constant 0 : i32
    %c0_i32_1 = arith.constant 0 : i32
    return %c0_i32, %c0_i32_0 : i32, i32
  }
  func.func @transform_4(%arg0: i32) -> (i32, i32) {
    %c0_i32 = arith.constant 0 : i32
    %c0_i32_0 = arith.constant 0 : i32
    %c0_i32_1 = arith.constant 0 : i32
    return %c0_i32, %c0_i32_0 : i32, i32
  }
  func.func @transform_5(%arg0: i32) -> (i32, i32) {
    %c0_i32 = arith.constant 0 : i32
    %c0_i32_0 = arith.constant 0 : i32
    return %arg0, %c0_i32 : i32, i32
  }
}

</mosaic_0001>

<bundles_post_ra>
// kernel: tpu_custom_call.1
= control target key start
LH: loop header
LB: loop body
LE: loop exit
PB: predicated region body
PF: predicated region fallthrough
CT: control target
= control target key end

     0   :  { %10 = vsyncpa [#allocation3], 0  ;;  %s1985_s0 = inlined_call_operand.hbm [shape: f32[32,768], index: 0, kind: input, shape index: {}]   ;;  %s1986_s1 = inlined_call_operand.hbm [shape: f32[768,128], index: 1, kind: input, shape index: {}]   ;;  %s1987_s2 = inlined_call_operand.vmem [shape: f32[1,128], index: 2, kind: input, shape index: {}]   ;;  %s1988_s3 = inlined_call_operand.hbm [shape: f32[128,768], index: 3, kind: input, shape index: {}]   ;;  %s1989_s4 = inlined_call_operand.vmem [shape: f32[1,768], index: 4, kind: input, shape index: {}]   ;;  %s1990_s5 = inlined_call_operand.hbm [shape: f32[32,768], index: 5, kind: output, shape index: {}]  }
   0x1   :  { %12 = vsyncpa [#allocation3 + $0x1], 0 }
   0x2   :  { %13 = vsyncpa [#allocation6], 0 }
   0x3   :  { %14 = vsyncpa [#allocation4], 0 }
   0x4   :  { %16 = vsyncpa [#allocation4 + $0x1], 0  ;;  %s1695_s18 = smov 0   ;;  %s1697_s19 = smov 0  }
   0x5   :  { %s1699_s20 = smov 0   ;;  %s1701_s21 = smov 0  }
   0x6 LB: > { %s1716_s22 = sadd.s32 4294967295, %s1652_s21   ;;  %s1095_s23 = sadd.s32 4294967294, %s1652_s21   ;;  %s1652_s21 = sphi %s1701_s21, %s2012_s21   ;;  %s1648_s20 = sphi %s1699_s20, %s2011_s20   ;;  %s1644_s19 = sphi %s1697_s19, %s2010_s19   ;;  %s1640_s18 = sphi %s1695_s18, %s2009_s18  }
   0x7   : > { %p42_p0 = scmp.ne.s32.totalorder %s1644_s19, %s1640_s18  ;;  %p1991_p1 = scmp.eq.s32.totalorder %s1716_s22, 0 }
   0x8   : > { %p156_p3 = scmp.eq.s32.totalorder %s1095_s23, 1  ;;  %p1096_p5 = scmp.ge.s32.totalorder %s1652_s21, 1 }
   0x9   : > { %p1725_p4 = por %p1991_p1, %p42_p0  ;;  %p163_p7 = scmp.lt.s32.totalorder %s1652_s21, 3 }
   0xa   : > { %p1730_p6 = por %p156_p3, %p42_p0  ;;  %s1654_s27 = smov [#allocation5]  }
   0xb   : > { %s1995_s24 = scalar_select %p1725_p4, 1, 0 }
   0xc   : > { %s1996_s25 = scalar_select %p1730_p6, 1, 0 }
   0xd   : > { %p1735_p8 = pnand %p1096_p5, %p163_p7  ;;  %s175_s28 = sshll.u32 %s1654_s27, 4  ;;  %s1739_s28 = int_to_ptr.vmem [resolvable:$true] %s175_s28 }
   0xe   : > { %s1655_s30 = smov [#allocation7]   ;;  %s1496_s9 = scalar_lea.hbm %s1986_s1, 12288 }
   0xf   : > { %p1434_p9 = pneg %p1735_p8  ;;  %s191_s6 = sshll.u32 %s1655_s30, 4  ;;  %s1750_s6 = int_to_ptr.vmem [resolvable:$true] %s191_s6 }
  0x10   : > { %p1497_p12 = scmp.ne.s32.totalorder %s1986_s1, %s1496_s9  ;;  %p1503_p5 = scmp.lt.u32.totalorder %s1496_s9, %s1986_s1 }
  0x11   : > { %p1746_p11 = pnand %p1434_p9, %p1991_p1 }
  0x13   : > { %p1498_p13 = pneg %p1746_p11 }
  0x15   : > { %p1499_p0 = pnand %p1498_p13, %p1497_p12 }
  0x17   : > { %p1500_p3 = pneg %p1499_p0 }
  0x19   : > { %p1505_p7 = pnand %p1503_p5, %p1500_p3 }
  0x1b   : > { %1508 = shalt.err (!%p1505_p7)
}
  0x1c   : > { %s1509_s14 = scalar_lea.vmem %s1739_s28, 12288  ;;  %p1517_p2 = scmp.lt.s32.totalorder %s1739_s28, %s1739_s28 }
  0x1d   : > { %p1510_p9 = scmp.ne.s32.totalorder %s1739_s28, %s1509_s14  ;;  %p1518_p12 = scmp.lt.s32.totalorder %s1509_s14, %s1509_s14 }
  0x1f   : > { %p1512_p10 = pnand %p1510_p9, %p1498_p13  ;;  %p1519_p0 = por %p1518_p12, %p1517_p2 }
  0x21   : > { %p1513_p1 = pneg %p1512_p10 }
  0x23   : > { %p1520_p6 = pnand %p1519_p0, %p1513_p1 }
  0x25   : > { %1523 = shalt.err (!%p1520_p6)
}
  0x26   : > { %s1656_s15 = smov 128   ;;  %s1657_s16 = smov 8  }
  0x27   : > { %1437 = dma.hbm_to_vmem [thread:$0]  (!%p1746_p11), %s1986_s1, 12288, %s1739_s28, [#allocation6], %s1656_s15, %s1656_s15, %s1657_s16  }
  0x28   : > { %s1524_s7 = scalar_lea.hbm %s1988_s3, 12288 }
  0x29   : > { %p1525_p2 = scmp.ne.s32.totalorder %s1988_s3, %s1524_s7  ;;  %p1531_p10 = scmp.lt.u32.totalorder %s1524_s7, %s1988_s3 }
  0x2b   : > { %p1527_p1 = pnand %p1525_p2, %p1498_p13 }
  0x2d   : > { %p1528_p6 = pneg %p1527_p1 }
  0x2f   : > { %p1533_p3 = pnand %p1531_p10, %p1528_p6 }
  0x31   : > { %1536 = shalt.err (!%p1533_p3)
}
  0x32   : > { %s1537_s28 = scalar_lea.vmem %s1750_s6, 12288  ;;  %p1545_p12 = scmp.lt.s32.totalorder %s1750_s6, %s1750_s6 }
  0x33   : > { %p1538_p5 = scmp.ne.s32.totalorder %s1750_s6, %s1537_s28  ;;  %p1546_p0 = scmp.lt.s32.totalorder %s1537_s28, %s1537_s28 }
  0x35   : > { %p1540_p7 = pnand %p1538_p5, %p1498_p13  ;;  %p1547_p2 = por %p1546_p0, %p1545_p12 }
  0x37   : > { %p1541_p9 = pneg %p1540_p7 }
  0x39   : > { %p1548_p1 = pnand %p1547_p2, %p1541_p9 }
  0x3b   : > { %1551 = shalt.err (!%p1548_p1)
}
  0x3c   : > { %s1992_s12 = smov 768   ;;  %s1659_s13 = smov 48  }
  0x3d   : > { %1440 = dma.hbm_to_vmem [thread:$0]  (!%p1746_p11), %s1988_s3, 12288, %s1750_s6, [#allocation6], %s1992_s12, %s1992_s12, %s1659_s13  }
  0x3e   : > { %s1808_s16 = sadd.s32 1, %s1652_s21   ;;  %s29_s23 = sadd.s32 1, %s1648_s20 }
  0x3f   : > { %s26_s17 = ssub.s32 %s1652_s21, %s1808_s16  ;;  %p36_p6 = scmp.ne.s32.totalorder %s1648_s20, %s1644_s19 }
  0x40   : > { %p27_p13 = scmp.eq.s32.totalorder %s26_s17, 0  ;;  %p37_p10 = scmp.eq.s32.totalorder %s1652_s21, 0 }
  0x41   : > { %p1999_p5 = scmp.eq.s32.totalorder %s1716_s22, 1  ;;  %p1451_p9 = scmp.lt.s32.totalorder %s1652_s21, 2 }
  0x42   : > { %s1817_s27 = scalar_select %p27_p13, %s1648_s20, %s29_s23  }
  0x43   : > { %p38_p3 = por %p37_p10, %p36_p6  ;;  %p1821_p7 = por %p1999_p5, %p36_p6 }
  0x44   : > { %s208_s30 = sand.u32 1, %s1648_s20   ;;  %s1419_s6 = smul.u32 1536, %s1652_s21 }
  0x45   : > { %s2000_s29 = scalar_select %p1821_p7, 1, 0 }
  0x46   : > { %s1418_s7 = smul.u32 96, %s208_s30  ;;  %p1828_p11 = pnand %p1451_p9, %p38_p3 }
  0x47   : > { %s1835_s11 = scalar_lea.hbm %s1985_s0, %s1419_s6  ;;  %s1839_s15 = scalar_lea.sflag [#allocation3], %s208_s30 }
  0x48   : > { %s212_s28 = scalar_lea.vmem [#allocation2], %s1418_s7  ;;  %s1552_s17 = scalar_lea.hbm %s1835_s11, 1536 }
  0x49   : > { %s220_s14 = sshll.u32 %s212_s28, 4  ;;  %p1553_p12 = scmp.ne.s32.totalorder %s1835_s11, %s1552_s17  ;;  %s1837_s14 = int_to_ptr.vmem [resolvable:$true] %s220_s14 }
  0x4a   : > { %p1554_p0 = pneg %p1828_p11  ;;  %s1557_s9 = scalar_lea.hbm %s1985_s0, 3072 }
  0x4b   : > { %p1558_p13 = scmp.lt.u32.totalorder %s1835_s11, %s1985_s0  ;;  %p1559_p6 = scmp.lt.u32.totalorder %s1557_s9, %s1552_s17 }
  0x4c   : > { %p1555_p2 = pnand %p1554_p0, %p1553_p12  ;;  %p1561_p3 = scmp.lt.u32.totalorder %s1552_s17, %s1835_s11 }
  0x4d   : > { %p1560_p10 = por %p1559_p6, %p1558_p13 }
  0x4e   : > { %p1556_p1 = pneg %p1555_p2 }
  0x4f   : > { %p1562_p5 = por %p1561_p3, %p1560_p10 }
  0x51   : > { %p1563_p9 = pnand %p1562_p5, %p1556_p1 }
  0x53   : > { %1566 = shalt.err (!%p1563_p9)
}
  0x54   : > { %s1567_s30 = scalar_lea.vmem %s1837_s14, 1536  ;;  %s1660_s7 = smov [#allocation2]  }
  0x55   : > { %p1568_p12 = scmp.ne.s32.totalorder %s1837_s14, %s1567_s30  ;;  %s1572_s28 = sshll.u32 %s1660_s7, 4  ;;  %s1573_s28 = int_to_ptr.vmem [resolvable:$false] %s1572_s28 }
  0x56   : > { %s1574_s12 = scalar_lea.vmem %s1573_s28, 3072  ;;  %p1575_p4 = scmp.lt.s32.totalorder %s1837_s14, %s1573_s28 }
  0x57   : > { %p1570_p2 = pnand %p1568_p12, %p1554_p0  ;;  %p1576_p13 = scmp.lt.s32.totalorder %s1574_s12, %s1567_s30 }
  0x59   : > { %p1571_p7 = pneg %p1570_p2  ;;  %p1577_p6 = por %p1576_p13, %p1575_p4 }
  0x5b   : > { %p1578_p10 = pnand %p1577_p6, %p1571_p7 }
  0x5d   : > { %1581 = shalt.err (!%p1578_p10)
}
  0x5e   : > { %s2002_s17 = smov 768   ;;  %232 = sbr.rel (%p1735_p8) target bundleno = 657 (0x291), region = 40 }
  0x5f   : > { %1444 = dma.hbm_to_vmem [thread:$0]  (!%p1828_p11), %s1835_s11, 1536, %s1837_s14, %s1839_s15, %s2002_s17, %s2002_s17, %s1659_s13  }
  0x60   : > { %s1873_s23 = sand.u32 (!%p1735_p8), 1, %s1644_s19   ;;  %p2003_p4 = scmp.ne.s32.totalorder (!%p1735_p8), %s1995_s24, 0 }
  0x61   : > { %s1420_s6 = smul.u32 (!%p1735_p8), 96, %s1873_s23  ;;  %s235_s9 = scalar_lea.sflag (!%p1735_p8), [#allocation3], %s1873_s23 }
  0x63   : > { %s1879_s8 = scalar_lea.vmem (!%p1735_p8), [#allocation2], %s1420_s6 }
  0x65   : > { %1627 = dma.done.wait (%p2003_p4), %s235_s9, 1536  }
  0x66   : > { %1629 = vsyncadd (%p2003_p4), %s235_s9, 4294965760  ;;  %p2004_p7 = scmp.eq.s32.totalorder %s1716_s22, 0 }
  0x68   : > { %1631 = dma.done.wait (%p2004_p7), [#allocation6], 24576   ;;  %p2005_p8 = pmov %p2004_p7 }
  0x69   : > { %v303_v0 = vld [vmem:[#allocation5 + $0x80] sm:$0xff]  ;;  %v304_v1 = vld [vmem:[#allocation5 + $0x88] sm:$0xff]  ;;  %v305_v11 = vld [vmem:[#allocation5 + $0x90] sm:$0xff]  ;;  %s1920_s14 = scalar_lea.vmem [#allocation8], %s1420_s6  ;;  %s1421_s15 = smul.u32 1536, %s1716_s22 }
  0x6a   : > { %1633 = vsyncadd (%p2005_p8), [#allocation6], 4294942720  ;;  %v287_v2 = vld [vmem:[#allocation5] sm:$0xff]  ;;  %v1226_v3 = vpack.c.bf16 %v304_v1, %v303_v0  ;;  %v288_v4 = vld [vmem:[#allocation5 + $0x8] sm:$0xff]  ;;  %s1003_s10 = sshll.u32 %s1920_s14, 4  ;;  %s989_s22 = scalar_lea.sflag [#allocation4], %s1873_s23  ;;  %s1939_s10 = int_to_ptr.vmem [resolvable:$true] %s1003_s10 }
  0x6b   : > { %v335_v5 = vld [vmem:[#allocation5 + $0x180] sm:$0xff]  ;;  %v336_v6 = vld [vmem:[#allocation5 + $0x188] sm:$0xff]  ;;  %v1228_v7 = vpack.c.bf16 %v288_v4, %v287_v2  ;;  %v306_v13 = vld [vmem:[#allocation5 + $0x98] sm:$0xff]  ;;  %s1937_s28 = scalar_lea.hbm %s1990_s5, %s1421_s15  ;;  %s1582_s12 = scalar_lea.vmem %s1939_s10, 1536 }
  0x6c   : > { %v1258_v8 = vpack.c.bf16 %v336_v6, %v335_v5  ;;  %v319_v9 = vld [vmem:[#allocation5 + $0x100] sm:$0xff]  ;;  %v320_v10 = vld [vmem:[#allocation5 + $0x108] sm:$0xff]  ;;  %1227 = vmatprep.subr.bf16.mxu0 %v1226_v3  ;;  %v289_v14 = vld [vmem:[#allocation5 + $0x10] sm:$0xff]  ;;  %v1230_v16 = vpack.c.bf16 %v306_v13, %v305_v11  ;;  %p1583_p11 = scmp.ne.s32.totalorder %s1939_s10, %s1582_s12  ;;  %p2006_p0 = scmp.ne.s32.totalorder %s2000_s29, 0 }
  0x6d   : > { %v1260_v12 = vpack.c.bf16 %v320_v10, %v319_v9  ;;  %v290_v15 = vld [vmem:[#allocation5 + $0x18] sm:$0xff]  ;;  %1229 = vmatpush3.bf16.msra.mxu0 %v1228_v7  ;;  %v337_v18 = vld [vmem:[#allocation5 + $0x190] sm:$0xff]  ;;  %v307_v23 = vld [vmem:[#allocation5 + $0xa0] sm:$0xff]  ;;  %s1662_s17 = smov [#allocation8]  }
  0x6e   : > { %1259 = vmatprep.subr.bf16.mxu1 %v1258_v8  ;;  %v1232_v17 = vpack.c.bf16 %v290_v15, %v289_v14  ;;  %v338_v19 = vld [vmem:[#allocation5 + $0x198] sm:$0xff]  ;;  %v321_v20 = vld [vmem:[#allocation5 + $0x110] sm:$0xff]  ;;  %v308_v24 = vld [vmem:[#allocation5 + $0xa8] sm:$0xff]  ;;  %1231 = vmatprep.subr.bf16.mxu0 %v1230_v16  ;;  %p1584_p1 = pnand %p1583_p11, %p2006_p0  ;;  %s1586_s6 = sshll.u32 %s1662_s17, 4  ;;  %s1587_s6 = int_to_ptr.vmem [resolvable:$false] %s1586_s6 }
  0x6f   : > { %1261 = vmatpush3.bf16.msra.mxu1 %v1260_v12  ;;  %v1262_v21 = vpack.c.bf16 %v338_v19, %v337_v18  ;;  %v322_v22 = vld [vmem:[#allocation5 + $0x118] sm:$0xff]  ;;  %v1234_v26 = vpack.c.bf16 %v308_v24, %v307_v23  ;;  %v291_v27 = vld [vmem:[#allocation5 + $0x20] sm:$0xff]  ;;  %v292_v28 = vld [vmem:[#allocation5 + $0x28] sm:$0xff]  ;;  %s1588_s9 = scalar_lea.vmem %s1587_s6, 3072  ;;  %p1589_p5 = scmp.lt.s32.totalorder %s1939_s10, %s1587_s6 }
  0x70   : > { %v1264_v25 = vpack.c.bf16 %v322_v22, %v321_v20  ;;  %v339_v29 = vld [vmem:[#allocation5 + $0x1a0] sm:$0xff]  ;;  %v340_v30 = vld [vmem:[#allocation5 + $0x1a8] sm:$0xff]  ;;  %v1236_v33 = vpack.c.bf16 %v292_v28, %v291_v27  ;;  %v309_v35 = vld [vmem:[#allocation5 + $0xb0] sm:$0xff]  ;;  %p1585_p3 = pneg %p1584_p1  ;;  %p1590_p9 = scmp.lt.s32.totalorder %s1588_s9, %s1582_s12 }
  0x71   : > { %1263 = vmatprep.subr.bf16.mxu1 %v1262_v21  ;;  %v323_v31 = vld [vmem:[#allocation5 + $0x120] sm:$0xff]  ;;  %v324_v32 = vld [vmem:[#allocation5 + $0x128] sm:$0xff]  ;;  %1233 = vmatpush3.bf16.msra.mxu0 %v1232_v17  ;;  %v1266_v34 = vpack.c.bf16 %v340_v30, %v339_v29  ;;  %v310_v36 = vld [vmem:[#allocation5 + $0xb8] sm:$0xff] }
  0x72   : > { %v293_v37 = vld [vmem:[#allocation5 + $0x30] sm:$0xff]  ;;  %1235 = vmatprep.subr.bf16.mxu0 %v1234_v26  ;;  %v1268_v38 = vpack.c.bf16 %v324_v32, %v323_v31  ;;  %v1238_v39 = vpack.c.bf16 %v310_v36, %v309_v35  ;;  %v294_v40 = vld [vmem:[#allocation5 + $0x38] sm:$0xff]  ;;  %v311_v46 = vld [vmem:[#allocation5 + $0xc0] sm:$0xff]  ;;  %p1591_p12 = por %p1590_p9, %p1589_p5 }
  0x73   : > { %1265 = vmatpush3.bf16.msra.mxu1 %v1264_v25  ;;  %v341_v41 = vld [vmem:[#allocation5 + $0x1b0] sm:$0xff]  ;;  %v342_v42 = vld [vmem:[#allocation5 + $0x1b8] sm:$0xff]  ;;  %v312_v47 = vld [vmem:[#allocation5 + $0xc8] sm:$0xff]  ;;  %v1240_v48 = vpack.c.bf16 %v294_v40, %v293_v37 }
  0x74   : > { %1267 = vmatprep.subr.bf16.mxu1 %v1266_v34  ;;  %v1270_v43 = vpack.c.bf16 %v342_v42, %v341_v41  ;;  %v325_v44 = vld [vmem:[#allocation5 + $0x130] sm:$0xff]  ;;  %v326_v45 = vld [vmem:[#allocation5 + $0x138] sm:$0xff]  ;;  %v343_v49 = vld [vmem:[#allocation5 + $0x1c0] sm:$0xff]  ;;  %v1242_v52 = vpack.c.bf16 %v312_v47, %v311_v46  ;;  %p1592_p2 = pnand %p1591_p12, %p1585_p3 }
  0x75   : > { %1237 = vmatpush3.bf16.msra.mxu0 %v1236_v33  ;;  %v344_v50 = vld [vmem:[#allocation5 + $0x1c8] sm:$0xff]  ;;  %v1272_v51 = vpack.c.bf16 %v326_v45, %v325_v44  ;;  %v295_v53 = vld [vmem:[#allocation5 + $0x40] sm:$0xff]  ;;  %v313_v58 = vld [vmem:[#allocation5 + $0xd0] sm:$0xff] }
  0x76   : > { %1239 = vmatprep.subr.bf16.mxu0 %v1238_v39  ;;  %v296_v54 = vld [vmem:[#allocation5 + $0x48] sm:$0xff]  ;;  %v327_v55 = vld [vmem:[#allocation5 + $0x140] sm:$0xff]  ;;  %v1274_v56 = vpack.c.bf16 %v344_v50, %v343_v49  ;;  %v314_v59 = vld [vmem:[#allocation5 + $0xd8] sm:$0xff] }
  0x77   : > { %1269 = vmatpush3.bf16.msra.mxu1 %v1268_v38  ;;  %v328_v57 = vld [vmem:[#allocation5 + $0x148] sm:$0xff]  ;;  %v345_v60 = vld [vmem:[#allocation5 + $0x1d0] sm:$0xff]  ;;  %v346_v61 = vld [vmem:[#allocation5 + $0x1d8] sm:$0xff]  ;;  %v1244_v62 = vpack.c.bf16 %v296_v54, %v295_v53  ;;  %v1246_v0 = vpack.c.bf16 %v314_v59, %v313_v58 }
  0x78   : > { %1271 = vmatprep.subr.bf16.mxu1 %v1270_v43  ;;  %v1276_v63 = vpack.c.bf16 %v328_v57, %v327_v55  ;;  %v297_v1 = vld [vmem:[#allocation5 + $0x50] sm:$0xff]  ;;  %v298_v2 = vld [vmem:[#allocation5 + $0x58] sm:$0xff]  ;;  %v1278_v4 = vpack.c.bf16 %v346_v61, %v345_v60  ;;  %v315_v6 = vld [vmem:[#allocation5 + $0xe0] sm:$0xff] }
  0x79   : > { %1241 = vmatpush3.bf16.msra.mxu0 %v1240_v48  ;;  %v329_v3 = vld [vmem:[#allocation5 + $0x150] sm:$0xff]  ;;  %v330_v5 = vld [vmem:[#allocation5 + $0x158] sm:$0xff]  ;;  %v316_v7 = vld [vmem:[#allocation5 + $0xe8] sm:$0xff]  ;;  %v1248_v10 = vpack.c.bf16 %v298_v2, %v297_v1 }
  0x7a   : > { %1243 = vmatprep.subr.bf16.mxu0 %v1242_v52  ;;  %v347_v8 = vld [vmem:[#allocation5 + $0x1e0] sm:$0xff]  ;;  %v348_v9 = vld [vmem:[#allocation5 + $0x1e8] sm:$0xff]  ;;  %v1280_v13 = vpack.c.bf16 %v330_v5, %v329_v3  ;;  %v1250_v14 = vpack.c.bf16 %v316_v7, %v315_v6  ;;  %v317_v19 = vld [vmem:[#allocation5 + $0xf0] sm:$0xff] }
  0x7b   : > { %1273 = vmatpush3.bf16.msra.mxu1 %v1272_v51  ;;  %v299_v11 = vld [vmem:[#allocation5 + $0x60] sm:$0xff]  ;;  %v276_v12 = vld [vmem:[%s1879_s8 + $0x8] sm:$0xff]  ;;  %v1282_v18 = vpack.c.bf16 %v348_v9, %v347_v8  ;;  %v318_v20 = vld [vmem:[#allocation5 + $0xf8] sm:$0xff] }
  0x7c   : > { %1275 = vmatprep.subr.bf16.mxu1 %v1274_v56  ;;  %v300_v15 = vld [vmem:[#allocation5 + $0x68] sm:$0xff]  ;;  %v331_v16 = vld [vmem:[#allocation5 + $0x160] sm:$0xff]  ;;  %454 = vmatprep.mubr.f32.mxu0 %v276_v12  ;;  %v278_v21 = vld [vmem:[%s1879_s8 + $0x18] sm:$0xff]  ;;  %v1254_v26 = vpack.c.bf16 %v318_v20, %v317_v19 }
  0x7d   : > { %1245 = vmatpush3.bf16.msra.mxu0 %v1244_v62  ;;  %v332_v17 = vld [vmem:[#allocation5 + $0x168] sm:$0xff]  ;;  %v349_v22 = vld [vmem:[#allocation5 + $0x1f0] sm:$0xff]  ;;  %v350_v23 = vld [vmem:[#allocation5 + $0x1f8] sm:$0xff]  ;;  %529 = vmatprep.mubr.f32.mxu1 %v278_v21  ;;  %v1252_v24 = vpack.c.bf16 %v300_v15, %v299_v11 }
  0x7e   : > { %1247 = vmatprep.subr.bf16.mxu0 %v1246_v0  ;;  %v1284_v25 = vpack.c.bf16 %v332_v17, %v331_v16  ;;  %v301_v27 = vld [vmem:[#allocation5 + $0x70] sm:$0xff]  ;;  %v302_v28 = vld [vmem:[#allocation5 + $0x78] sm:$0xff]  ;;  %v1286_v30 = vpack.c.bf16 %v350_v23, %v349_v22  ;;  %v367_v32 = vld [vmem:[#allocation5 + $0x280] sm:$0xff] }
  0x7f   : > { %1277 = vmatpush3.bf16.msra.mxu1 %v1276_v63  ;;  %v333_v29 = vld [vmem:[#allocation5 + $0x170] sm:$0xff]  ;;  %v334_v31 = vld [vmem:[#allocation5 + $0x178] sm:$0xff]  ;;  %v368_v33 = vld [vmem:[#allocation5 + $0x288] sm:$0xff]  ;;  %v1256_v34 = vpack.c.bf16 %v302_v28, %v301_v27 }
  0x80   : > { %1279 = vmatprep.subr.bf16.mxu1 %v1278_v4  ;;  %v1288_v35 = vpack.c.bf16 %v334_v31, %v333_v29  ;;  %v1290_v36 = vpack.c.bf16 %v368_v33, %v367_v32  ;;  %v351_v37 = vld [vmem:[#allocation5 + $0x200] sm:$0xff]  ;;  %v352_v38 = vld [vmem:[#allocation5 + $0x208] sm:$0xff]  ;;  %v369_v39 = vld [vmem:[#allocation5 + $0x290] sm:$0xff] }
  0x81   : > { %1249 = vmatpush3.bf16.msra.mxu0 %v1248_v10  ;;  %v370_v40 = vld [vmem:[#allocation5 + $0x298] sm:$0xff]  ;;  %v275_v41 = vld [vmem:[%s1879_s8] sm:$0xff]  ;;  %v1292_v42 = vpack.c.bf16 %v352_v38, %v351_v37  ;;  %v277_v43 = vld [vmem:[%s1879_s8 + $0x10] sm:$0xff] }
  0x82   : > { %1251 = vmatprep.subr.bf16.mxu0 %v1250_v14  ;;  %v1294_v44 = vpack.c.bf16 %v370_v40, %v369_v39  ;;  %v353_v45 = vld [vmem:[#allocation5 + $0x210] sm:$0xff]  ;;  %v354_v46 = vld [vmem:[#allocation5 + $0x218] sm:$0xff]  ;;  %v371_v47 = vld [vmem:[#allocation5 + $0x2a0] sm:$0xff] }
  0x83   : > { %1281 = vmatpush3.bf16.msra.mxu1 %v1280_v13  ;;  %v372_v48 = vld [vmem:[#allocation5 + $0x2a8] sm:$0xff]  ;;  %v282_v49 = vld [vmem:[%s1879_s8 + $0x38] sm:$0xff]  ;;  %v1296_v51 = vpack.c.bf16 %v354_v46, %v353_v45  ;;  %v281_v52 = vld [vmem:[%s1879_s8 + $0x30] sm:$0xff] }
  0x84   : > { %1283 = vmatprep.subr.bf16.mxu1 %v1282_v18  ;;  %v284_v50 = vld [vmem:[%s1879_s8 + $0x48] sm:$0xff]  ;;  %v1298_v53 = vpack.c.bf16 %v372_v48, %v371_v47  ;;  %v355_v54 = vld [vmem:[#allocation5 + $0x220] sm:$0xff]  ;;  %v373_v57 = vld [vmem:[#allocation5 + $0x2b0] sm:$0xff] }
  0x85   : > { %1253 = vmatpush3.bf16.msra.mxu0 %v1252_v24  ;;  %v356_v55 = vld [vmem:[#allocation5 + $0x228] sm:$0xff]  ;;  %v283_v56 = vld [vmem:[%s1879_s8 + $0x40] sm:$0xff]  ;;  %v374_v58 = vld [vmem:[#allocation5 + $0x2b8] sm:$0xff] }
  0x86   : > { %1255 = vmatprep.subr.bf16.mxu0 %v1254_v26  ;;  %v280_v59 = vld [vmem:[%s1879_s8 + $0x28] sm:$0xff]  ;;  %v1300_v60 = vpack.c.bf16 %v356_v55, %v355_v54  ;;  %v1302_v61 = vpack.c.bf16 %v374_v58, %v373_v57  ;;  %v357_v62 = vld [vmem:[#allocation5 + $0x230] sm:$0xff]  ;;  %v358_v63 = vld [vmem:[#allocation5 + $0x238] sm:$0xff] }
  0x87   : > { %1285 = vmatpush3.bf16.msra.mxu1 %v1284_v25  ;;  %v375_v0 = vld [vmem:[#allocation5 + $0x2c0] sm:$0xff]  ;;  %v376_v1 = vld [vmem:[#allocation5 + $0x2c8] sm:$0xff]  ;;  %v1304_v2 = vpack.c.bf16 %v358_v63, %v357_v62  ;;  %v377_v6 = vld [vmem:[#allocation5 + $0x2d0] sm:$0xff] }
  0x88   : > { %1287 = vmatprep.subr.bf16.mxu1 %v1286_v30  ;;  %v1306_v3 = vpack.c.bf16 %v376_v1, %v375_v0  ;;  %v359_v4 = vld [vmem:[#allocation5 + $0x240] sm:$0xff]  ;;  %v360_v5 = vld [vmem:[#allocation5 + $0x248] sm:$0xff]  ;;  %v378_v7 = vld [vmem:[#allocation5 + $0x2d8] sm:$0xff] }
  0x89   : > { %1257 = vmatpush3.bf16.msra.mxu0 %v1256_v34  ;;  %v1308_v8 = vpack.c.bf16 %v360_v5, %v359_v4  ;;  %v1310_v9 = vpack.c.bf16 %v378_v7, %v377_v6  ;;  %v361_v10 = vld [vmem:[#allocation5 + $0x250] sm:$0xff]  ;;  %v362_v11 = vld [vmem:[#allocation5 + $0x258] sm:$0xff]  ;;  %v379_v12 = vld [vmem:[#allocation5 + $0x2e0] sm:$0xff] }
  0x8a   : > { %1291 = vmatprep.subr.bf16.mxu0 %v1290_v36  ;;  %v380_v13 = vld [vmem:[#allocation5 + $0x2e8] sm:$0xff]  ;;  %v1312_v14 = vpack.c.bf16 %v362_v11, %v361_v10  ;;  %v363_v16 = vld [vmem:[#allocation5 + $0x260] sm:$0xff]  ;;  %v381_v18 = vld [vmem:[#allocation5 + $0x2f0] sm:$0xff] }
  0x8b   : > { %1289 = vmatpush3.bf16.msra.mxu1 %v1288_v35  ;;  %v1314_v15 = vpack.c.bf16 %v380_v13, %v379_v12  ;;  %v364_v17 = vld [vmem:[#allocation5 + $0x268] sm:$0xff]  ;;  %v382_v19 = vld [vmem:[#allocation5 + $0x2f8] sm:$0xff]  ;;  %v365_v22 = vld [vmem:[#allocation5 + $0x270] sm:$0xff] }
  0x8c   : > { %455 = vmatmul.mubr.f32.vlgmr.msra.gmra.mrb[0].mxu0 %v275_v41  ;;  %v1316_v20 = vpack.c.bf16 %v364_v17, %v363_v16  ;;  %v1318_v21 = vpack.c.bf16 %v382_v19, %v381_v18  ;;  %v366_v23 = vld [vmem:[#allocation5 + $0x278] sm:$0xff]  ;;  %v279_v25 = vld [vmem:[%s1879_s8 + $0x20] sm:$0xff]  ;;  %v285_v27 = vld [vmem:[%s1879_s8 + $0x50] sm:$0xff] }
  0x8d   : > { %1293 = vmatpush3.bf16.msra.mxu0 %v1292_v42  ;;  %459 = vmatprep.mubr.f32.mxu0 %v282_v49  ;;  %v1320_v24 = vpack.c.bf16 %v366_v23, %v365_v22  ;;  %v286_v26 = vld [vmem:[%s1879_s8 + $0x58] sm:$0xff]  ;;  %v618_v28 = vld [vmem:[#allocation7 + $0x8] sm:$0xff]  ;;  %v617_v31 = vld [vmem:[#allocation7] sm:$0xff] }
  0x8e   : > { %530 = vmatmul.mubr.f32.vlgmr.msra.gmra.mrb[0].mxu1 %v277_v43  ;;  %1295 = vmatprep.subr.bf16.mxu0 %v1294_v44  ;;  %v624_v29 = vld [vmem:[#allocation7 + $0x38] sm:$0xff]  ;;  %v623_v32 = vld [vmem:[#allocation7 + $0x30] sm:$0xff]  ;;  %v626_v35 = vld [vmem:[#allocation7 + $0x48] sm:$0xff] }
  0x8f   : > { %534 = vmatprep.mubr.f32.mxu1 %v284_v50  ;;  %v1322_v30 = vpack.c.bf16 %v624_v29, %v618_v28  ;;  %v620_v33 = vld [vmem:[#allocation7 + $0x18] sm:$0xff]  ;;  %v1324_v34 = vpack.c.bf16 %v623_v32, %v617_v31  ;;  %v619_v36 = vld [vmem:[#allocation7 + $0x10] sm:$0xff]  ;;  %v625_v37 = vld [vmem:[#allocation7 + $0x40] sm:$0xff] }
  0x90   : > { %460 = vmatmul.mubr.f32.gmra.mrb[2].mxu0 %v281_v52  ;;  %v1354_v38 = vpack.c.bf16 %v626_v35, %v620_v33  ;;  %v1356_v39 = vpack.c.bf16 %v625_v37, %v619_v36  ;;  %v630_v40 = vld [vmem:[#allocation7 + $0x68] sm:$0xff]  ;;  %v636_v41 = vld [vmem:[#allocation7 + $0x98] sm:$0xff]  ;;  %v629_v42 = vld [vmem:[#allocation7 + $0x60] sm:$0xff] }
  0x91   : > { %1297 = vmatpush3.bf16.msra.mxu0 %v1296_v51  ;;  %604 = vmatprep.mubr.f32.mxu0 %v280_v59  ;;  %v1326_v43 = vpack.c.bf16 %v636_v41, %v630_v40  ;;  %v635_v44 = vld [vmem:[#allocation7 + $0x90] sm:$0xff]  ;;  %v632_v45 = vld [vmem:[#allocation7 + $0x78] sm:$0xff]  ;;  %v638_v46 = vld [vmem:[#allocation7 + $0xa8] sm:$0xff] }
  0x92   : > { %535 = vmatmul.mubr.f32.gmra.mrb[2].mxu1 %v283_v56  ;;  %1299 = vmatprep.subr.bf16.mxu0 %v1298_v53  ;;  %v1328_v47 = vpack.c.bf16 %v635_v44, %v629_v42  ;;  %v1358_v48 = vpack.c.bf16 %v638_v46, %v632_v45  ;;  %v631_v49 = vld [vmem:[#allocation7 + $0x70] sm:$0xff]  ;;  %v637_v50 = vld [vmem:[#allocation7 + $0xa0] sm:$0xff]  ;;  %v642_v51 = vld [vmem:[#allocation7 + $0xc8] sm:$0xff] }
  0x93   : > { %1323 = vmatprep.subr.bf16.mxu1 %v1322_v30  ;;  %v1360_v52 = vpack.c.bf16 %v637_v50, %v631_v49  ;;  %v648_v53 = vld [vmem:[#allocation7 + $0xf8] sm:$0xff]  ;;  %v641_v54 = vld [vmem:[#allocation7 + $0xc0] sm:$0xff]  ;;  %v647_v55 = vld [vmem:[#allocation7 + $0xf0] sm:$0xff] }
  0x94   : > { %1325 = vmatpush1.bf16.msra.mxu1 %v1324_v34  ;;  %v1330_v56 = vpack.c.bf16 %v648_v53, %v642_v51  ;;  %v644_v57 = vld [vmem:[#allocation7 + $0xd8] sm:$0xff]  ;;  %v650_v58 = vld [vmem:[#allocation7 + $0x108] sm:$0xff]  ;;  %v643_v59 = vld [vmem:[#allocation7 + $0xd0] sm:$0xff] }
  0x95   : > { %1301 = vmatpush3.bf16.msra.mxu0 %v1300_v60  ;;  %1327 = vmatprep.subr.bf16.mxu1 %v1326_v43  ;;  %v1332_v60 = vpack.c.bf16 %v647_v55, %v641_v54  ;;  %v649_v62 = vld [vmem:[#allocation7 + $0x100] sm:$0xff]  ;;  %v654_v63 = vld [vmem:[#allocation7 + $0x128] sm:$0xff]  ;;  %v660_v0 = vld [vmem:[#allocation7 + $0x158] sm:$0xff] }
  0x96   : > { %1303 = vmatprep.subr.bf16.mxu0 %v1302_v61  ;;  %v1362_v61 = vpack.c.bf16 %v650_v58, %v644_v57  ;;  %v1334_v1 = vpack.c.bf16 %v660_v0, %v654_v63  ;;  %v656_v4 = vld [vmem:[#allocation7 + $0x138] sm:$0xff]  ;;  %v1364_v5 = vpack.c.bf16 %v649_v62, %v643_v59  ;;  %v662_v6 = vld [vmem:[#allocation7 + $0x168] sm:$0xff]  ;;  %v655_v7 = vld [vmem:[#allocation7 + $0x130] sm:$0xff]  ;;  %v1661_v63 = vmov 0.0  }
  0x97   : > { %v666_v10 = vld [vmem:[#allocation7 + $0x188] sm:$0xff]  ;;  %v672_v11 = vld [vmem:[#allocation7 + $0x1b8] sm:$0xff]  ;;  %v665_v16 = vld [vmem:[#allocation7 + $0x180] sm:$0xff]  ;;  %809 = vmatprep.mubr.f32.mxu1 %v1661_v63 }
  0x98   : > { %1329 = vmatpush1.bf16.msra.mxu1 %v1328_v47  ;;  %v668_v13 = vld [vmem:[#allocation7 + $0x198] sm:$0xff]  ;;  %v671_v17 = vld [vmem:[#allocation7 + $0x1b0] sm:$0xff]  ;;  %v678_v19 = vld [vmem:[#allocation7 + $0x1e8] sm:$0xff] }
  0x99   : > { %1305 = vmatpush3.bf16.msra.mxu0 %v1304_v2  ;;  %1331 = vmatprep.subr.bf16.mxu1 %v1330_v56  ;;  %v653_v2 = vld [vmem:[#allocation7 + $0x120] sm:$0xff]  ;;  %v667_v22 = vld [vmem:[#allocation7 + $0x190] sm:$0xff]  ;;  %v690_v31 = vld [vmem:[#allocation7 + $0x248] sm:$0xff] }
  0x9a   : > { %1307 = vmatprep.subr.bf16.mxu0 %v1306_v3  ;;  %v659_v3 = vld [vmem:[#allocation7 + $0x150] sm:$0xff]  ;;  %v673_v23 = vld [vmem:[#allocation7 + $0x1c0] sm:$0xff]  ;;  %v696_v32 = vld [vmem:[#allocation7 + $0x278] sm:$0xff] }
  0x9b   : > { %v1336_v12 = vpack.c.bf16 %v659_v3, %v653_v2  ;;  %v677_v28 = vld [vmem:[#allocation7 + $0x1e0] sm:$0xff]  ;;  %v683_v29 = vld [vmem:[#allocation7 + $0x210] sm:$0xff]  ;;  %v1372_v30 = vpack.c.bf16 %v673_v23, %v667_v22  ;;  %v1346_v37 = vpack.c.bf16 %v696_v32, %v690_v31  ;;  %v692_v41 = vld [vmem:[#allocation7 + $0x258] sm:$0xff] }
  0x9c   : > { %1333 = vmatpush1.bf16.msra.mxu1 %v1332_v60  ;;  %v679_v34 = vld [vmem:[#allocation7 + $0x1f0] sm:$0xff]  ;;  %v685_v35 = vld [vmem:[#allocation7 + $0x220] sm:$0xff]  ;;  %v1344_v36 = vpack.c.bf16 %v683_v29, %v677_v28  ;;  %v698_v43 = vld [vmem:[#allocation7 + $0x288] sm:$0xff] }
  0x9d   : > { %1309 = vmatpush3.bf16.msra.mxu0 %v1308_v8  ;;  %v1366_v8 = vpack.c.bf16 %v662_v6, %v656_v4  ;;  %1335 = vmatprep.subr.bf16.mxu1 %v1334_v1  ;;  %v695_v40 = vld [vmem:[#allocation7 + $0x270] sm:$0xff]  ;;  %v697_v45 = vld [vmem:[#allocation7 + $0x280] sm:$0xff]  ;;  %v1378_v46 = vpack.c.bf16 %v698_v43, %v692_v41  ;;  %v708_v49 = vld [vmem:[#allocation7 + $0x2d8] sm:$0xff] }
  0x9e   : > { %1311 = vmatprep.subr.bf16.mxu0 %v1310_v9  ;;  %v661_v9 = vld [vmem:[#allocation7 + $0x160] sm:$0xff]  ;;  %v691_v44 = vld [vmem:[#allocation7 + $0x250] sm:$0xff]  ;;  %v704_v53 = vld [vmem:[#allocation7 + $0x2b8] sm:$0xff] }
  0x9f   : > { %v1368_v18 = vpack.c.bf16 %v661_v9, %v655_v7  ;;  %v1380_v47 = vpack.c.bf16 %v697_v45, %v691_v44  ;;  %v701_v51 = vld [vmem:[#allocation7 + $0x2a0] sm:$0xff]  ;;  %v710_v55 = vld [vmem:[#allocation7 + $0x2e8] sm:$0xff]  ;;  %v703_v56 = vld [vmem:[#allocation7 + $0x2b0] sm:$0xff] }
  0xa0   : > { %1337 = vmatpush1.bf16.msra.mxu1 %v1336_v12  ;;  %v709_v57 = vld [vmem:[#allocation7 + $0x2e0] sm:$0xff]  ;;  %v1382_v58 = vpack.c.bf16 %v710_v55, %v704_v53  ;;  %v622_v60 = vld [vmem:[#allocation7 + $0x28] sm:$0xff]  ;;  %v640_v23 = vld [vmem:[#allocation7 + $0xb8] sm:$0xff] }
  0xa1   : > { %1313 = vmatpush3.bf16.msra.mxu0 %v1312_v14  ;;  %v674_v14 = vld [vmem:[#allocation7 + $0x1c8] sm:$0xff]  ;;  %v1384_v59 = vpack.c.bf16 %v709_v57, %v703_v56  ;;  %v1106_v1 = vld [vmem:[%s1987_s2] ss:$0 sm:$0xff]  ;;  %v639_v32 = vld [vmem:[#allocation7 + $0xb0] sm:$0xff] }
  0xa2   : > { %1315 = vmatprep.subr.bf16.mxu0 %v1314_v15  ;;  %v1338_v15 = vpack.c.bf16 %v672_v11, %v666_v10  ;;  %v634_v22 = vld [vmem:[#allocation7 + $0x88] sm:$0xff]  ;;  %v633_v31 = vld [vmem:[#allocation7 + $0x80] sm:$0xff] }
  0xa3   : > { %v658_v41 = vld [vmem:[#allocation7 + $0x148] sm:$0xff]  ;;  %v657_v45 = vld [vmem:[#allocation7 + $0x140] sm:$0xff] }
  0xa4   : > { %1339 = vmatprep.subr.bf16.mxu1 %v1338_v15  ;;  %v682_v53 = vld [vmem:[#allocation7 + $0x208] sm:$0xff]  ;;  %v681_v57 = vld [vmem:[#allocation7 + $0x200] sm:$0xff] }
  0xa5   : > { %1317 = vmatpush3.bf16.msra.mxu0 %v1316_v20  ;;  %v684_v20 = vld [vmem:[#allocation7 + $0x218] sm:$0xff] }
  0xa6   : > { %1319 = vmatprep.subr.bf16.mxu0 %v1318_v21  ;;  %v1370_v21 = vpack.c.bf16 %v674_v14, %v668_v13 }
  0xa9   : > { %1321 = vmatpush3.bf16.msra.mxu0 %v1320_v24  ;;  %v1340_v24 = vpack.c.bf16 %v671_v17, %v665_v16 }
  0xaa   : > { %1355 = vmatprep.subr.bf16.mxu0 %v1354_v38  ;;  %v1376_v38 = vpack.c.bf16 %v685_v35, %v679_v34  ;;  %v652_v34 = vld [vmem:[#allocation7 + $0x118] sm:$0xff] }
  0xab   : > { %1341 = vmatpush1.bf16.msra.mxu1 %v1340_v24 }
  0xac   : > { %605 = vmatmul.mubr.f32.vlgmr.msra.gmra.mrb[4].mxu0 %v279_v25  ;;  %v680_v25 = vld [vmem:[#allocation7 + $0x1f8] sm:$0xff] }
  0xad   : > { %609 = vmatprep.mubr.f32.mxu0 %v286_v26  ;;  %1357 = vmatpush1.bf16.msra.mxu0 %v1356_v39  ;;  %v686_v26 = vld [vmem:[#allocation7 + $0x228] sm:$0xff]  ;;  %v689_v39 = vld [vmem:[#allocation7 + $0x240] sm:$0xff] }
  0xae   : > { %1359 = vmatprep.subr.bf16.mxu0 %v1358_v48  ;;  %v1374_v33 = vpack.c.bf16 %v686_v26, %v680_v25  ;;  %v1348_v42 = vpack.c.bf16 %v695_v40, %v689_v39  ;;  %v702_v48 = vld [vmem:[#allocation7 + $0x2a8] sm:$0xff]  ;;  %v645_v39 = vld [vmem:[#allocation7 + $0xe0] sm:$0xff]  ;;  %v651_v40 = vld [vmem:[#allocation7 + $0x110] sm:$0xff] }
  0xaf   : > { %v1350_v50 = vpack.c.bf16 %v708_v49, %v702_v48  ;;  %v1396_v43 = vpack.c.bf16 %v651_v40, %v645_v39  ;;  %v676_v48 = vld [vmem:[#allocation7 + $0x1d8] sm:$0xff] }
  0xb0   : > { %610 = vmatmul.mubr.f32.gmra.mrb[6].mxu0 %v285_v27  ;;  %v1342_v27 = vpack.c.bf16 %v684_v20, %v678_v19  ;;  %v621_v20 = vld [vmem:[#allocation7 + $0x20] sm:$0xff] }
  0xb1   : > { %1361 = vmatpush1.bf16.msra.mxu0 %v1360_v52  ;;  %v707_v52 = vld [vmem:[#allocation7 + $0x2d0] sm:$0xff]  ;;  %886 = vmatprep.mubr.f32.mxu0 %v1661_v63 }
  0xb2   : > { %1363 = vmatprep.subr.bf16.mxu0 %v1362_v61  ;;  %1343 = vmatprep.subr.bf16.mxu1 %v1342_v27  ;;  %v1352_v54 = vpack.c.bf16 %v707_v52, %v701_v51  ;;  %v628_v61 = vld [vmem:[#allocation7 + $0x58] sm:$0xff]  ;;  %v669_v51 = vld [vmem:[#allocation7 + $0x1a0] sm:$0xff]  ;;  %v675_v52 = vld [vmem:[#allocation7 + $0x1d0] sm:$0xff] }
  0xb3   : > { %1345 = vmatpush1.bf16.msra.mxu1 %v1344_v36  ;;  %v1386_v62 = vpack.c.bf16 %v628_v61, %v622_v60  ;;  %v1392_v36 = vpack.c.bf16 %v639_v32, %v633_v31  ;;  %v1404_v55 = vpack.c.bf16 %v675_v52, %v669_v51  ;;  %v700_v60 = vld [vmem:[#allocation7 + $0x298] sm:$0xff] }
  0xb4   : > { %1347 = vmatprep.subr.bf16.mxu1 %v1346_v37 }
  0xb5   : > { %1365 = vmatpush1.bf16.msra.mxu0 %v1364_v5 }
  0xb6   : > { %1367 = vmatprep.subr.bf16.mxu0 %v1366_v8 }
  0xb7   : > { %1349 = vmatpush1.bf16.msra.mxu1 %v1348_v42  ;;  %v664_v42 = vld [vmem:[#allocation7 + $0x178] sm:$0xff] }
  0xb8   : > { %1351 = vmatprep.subr.bf16.mxu1 %v1350_v50  ;;  %v1398_v44 = vpack.c.bf16 %v664_v42, %v658_v41 }
  0xb9   : > { %1369 = vmatpush1.bf16.msra.mxu0 %v1368_v18 }
  0xba   : > { %1371 = vmatprep.subr.bf16.mxu0 %v1370_v21  ;;  %v627_v21 = vld [vmem:[#allocation7 + $0x50] sm:$0xff] }
  0xbb   : > { %1353 = vmatpush1.bf16.msra.mxu1 %v1352_v54  ;;  %v1388_v27 = vpack.c.bf16 %v627_v21, %v621_v20  ;;  %v688_v54 = vld [vmem:[#allocation7 + $0x238] sm:$0xff] }
  0xbc   : > { %1387 = vmatprep.subr.bf16.mxu1 %v1386_v62  ;;  %v1406_v56 = vpack.c.bf16 %v688_v54, %v682_v53 }
  0xbd   : > { %1373 = vmatpush1.bf16.msra.mxu0 %v1372_v30  ;;  %v1390_v30 = vpack.c.bf16 %v640_v23, %v634_v22 }
  0xbe   : > { %1375 = vmatprep.subr.bf16.mxu0 %v1374_v33  ;;  %v646_v33 = vld [vmem:[#allocation7 + $0xe8] sm:$0xff] }
  0xc1   : > { %1377 = vmatpush1.bf16.msra.mxu0 %v1376_v38  ;;  %v1394_v38 = vpack.c.bf16 %v652_v34, %v646_v33 }
  0xc2   : > { %1379 = vmatprep.subr.bf16.mxu0 %v1378_v46  ;;  %v663_v46 = vld [vmem:[#allocation7 + $0x170] sm:$0xff] }
  0xc3   : > { %v1400_v49 = vpack.c.bf16 %v663_v46, %v657_v45 }
  0xc5   : > { %1381 = vmatpush1.bf16.msra.mxu0 %v1380_v47  ;;  %v670_v47 = vld [vmem:[#allocation7 + $0x1a8] sm:$0xff] }
  0xc6   : > { %1383 = vmatprep.subr.bf16.mxu0 %v1382_v58  ;;  %v1402_v50 = vpack.c.bf16 %v676_v48, %v670_v47  ;;  %v687_v58 = vld [vmem:[#allocation7 + $0x230] sm:$0xff] }
  0xc7   : > { %v1408_v61 = vpack.c.bf16 %v687_v58, %v681_v57 }
  0xc9   : > { %1385 = vmatpush1.bf16.msra.mxu0 %v1384_v59  ;;  %v694_v59 = vld [vmem:[#allocation7 + $0x268] sm:$0xff] }
  0xca   : > { %v1410_v62 = vpack.c.bf16 %v700_v60, %v694_v59 }
 0x15f   : > { %v1144_v0 = vpop.f32.mrb[0].mxu0 }
 0x160   : > { %v1145_v2 = vpop.f32.mrb[1].mxu0 }
 0x161   : > { %v1182_v3 = vpop.f32.mrb[0].mxu1  ;;  %v1146_v4 = vadd.f32 %v1145_v2, %v1144_v0  ;;  %v693_v0 = vld [vmem:[#allocation7 + $0x260] sm:$0xff]  ;;  %v706_v2 = vld [vmem:[#allocation7 + $0x2c8] sm:$0xff] }
 0x162   : > { %v1183_v5 = vpop.f32.mrb[1].mxu1 }
 0x163   : > { %v1184_v6 = vadd.f32 %v1183_v5, %v1182_v3  ;;  %v457_v7 = vadd.f32 %v1146_v4, %v1106_v1  ;;  %v1147_v8 = vpop.f32.mrb[2].mxu0  ;;  %v712_v3 = vld [vmem:[#allocation7 + $0x2f8] sm:$0xff] }
 0x164   : > { %v1148_v9 = vpop.f32.mrb[3].mxu0  ;;  %v1414_v5 = vpack.c.bf16 %v712_v3, %v706_v2 }
 0x165   : > { %v1185_v10 = vpop.f32.mrb[2].mxu1  ;;  %v532_v11 = vadd.f32 %v1184_v6, %v457_v7  ;;  %v1149_v12 = vadd.f32 %v1148_v9, %v1147_v8  ;;  %v705_v6 = vld [vmem:[#allocation7 + $0x2c0] sm:$0xff]  ;;  %v711_v7 = vld [vmem:[#allocation7 + $0x2f0] sm:$0xff]  ;;  %v715_v9 = vlaneseq }
 0x166   : > { %v1186_v13 = vpop.f32.mrb[3].mxu1  ;;  %v1416_v8 = vpack.c.bf16 %v711_v7, %v705_v6 }
 0x167   : > { %v1187_v14 = vadd.f32 %v1186_v13, %v1185_v10  ;;  %v462_v15 = vadd.f32 %v1149_v12, %v1106_v1  ;;  %v699_v1 = vld [vmem:[#allocation7 + $0x290] sm:$0xff]  ;;  %v716_v10 = vshrl.u32 %v715_v9, 7  ;;  %v713_v13 = vld [vmem:[%s1989_s4] sm:$0x3f] }
 0x168   : > { %v1412_v4 = vpack.c.bf16 %v699_v1, %v693_v0 }
 0x169   : > { %v537_v16 = vadd.f32 %v1187_v14, %v462_v15  ;;  %v725_v12 = vsub.s32 2, %v716_v10  ;;  %v721_v14 = vsub.s32 1, %v716_v10  ;;  %v729_v15 = vsub.s32 3, %v716_v10 }
 0x17f   : > { %v1220_v17 = vpop.f32.mrb[4].mxu0 }
 0x180   : > { %v1221_v18 = vpop.f32.mrb[5].mxu0 }
 0x181   : > { %v1222_v19 = vadd.f32 %v1221_v18, %v1220_v17  ;;  %v726_v17 = vrot.slane %v713_v13, %v725_v12  ;;  %v722_v18 = vrot.slane %v713_v13, %v721_v14 }
 0x183   : > { %v607_v24 = vadd.f32 %v1222_v19, %v532_v11  ;;  %v1223_v25 = vpop.f32.mrb[6].mxu0  ;;  %v717_v11 = vsub.s32 0, %v716_v10  ;;  %v730_v19 = vrot.slane %v713_v13, %v729_v15 }
 0x184   : > { %v1224_v26 = vpop.f32.mrb[7].mxu0 }
 0x185   : > { %v1906_v28 = vmax.f32 %v607_v24, 0.0  ;;  %v1225_v29 = vadd.f32 %v1224_v26, %v1223_v25 }
 0x187   : > { %v612_v35 = vadd.f32 %v1225_v29, %v537_v16  ;;  %810 = vmatmul.mubr.f32.vlgmr.msra.gmra.mrb[4].mxu1 %v1906_v28  ;;  %887 = vmatmul.mubr.f32.vlgmr.msra.gmra.mrb[8].mxu0 %v1906_v28  ;;  %v718_v16 = vrot.slane %v713_v13, %v717_v11 }
 0x188   : > { %1389 = vmatpush1.bf16.msra.mxu1 %v1388_v27  ;;  %815 = vmatprep.mubr.f32.mxu1 %v1661_v63 }
 0x189   : > { %v616_v37 = vmax.f32 %v612_v35, 0.0  ;;  %892 = vmatprep.mubr.f32.mxu0 %v1661_v63  ;;  %1391 = vmatprep.subr.bf16.mxu1 %v1390_v30  ;;  %v733_v35 = vsub.s32 4, %v716_v10 }
 0x18b   : > { %816 = vmatmul.mubr.f32.gmra.mrb[6].mxu1 %v616_v37  ;;  %893 = vmatmul.mubr.f32.gmra.mrb[10].mxu0 %v616_v37 }
 0x18c   : > { %1393 = vmatpush1.bf16.msra.mxu1 %v1392_v36  ;;  %963 = vmatprep.mubr.f32.mxu1 %v1661_v63  ;;  %v737_v36 = vsub.s32 5, %v716_v10 }
 0x18d   : > { %1395 = vmatprep.subr.bf16.mxu1 %v1394_v38 }
 0x18e   : > { %v738_v38 = vrot.slane %v713_v13, %v737_v36 }
 0x190   : > { %1397 = vmatpush1.bf16.msra.mxu1 %v1396_v43 }
 0x191   : > { %1399 = vmatprep.subr.bf16.mxu1 %v1398_v44 }
 0x194   : > { %1401 = vmatpush1.bf16.msra.mxu1 %v1400_v49 }
 0x195   : > { %1403 = vmatprep.subr.bf16.mxu1 %v1402_v50 }
 0x198   : > { %1405 = vmatpush1.bf16.msra.mxu1 %v1404_v55 }
 0x199   : > { %1407 = vmatprep.subr.bf16.mxu1 %v1406_v56 }
 0x19c   : > { %1409 = vmatpush1.bf16.msra.mxu1 %v1408_v61 }
 0x19d   : > { %1411 = vmatprep.subr.bf16.mxu1 %v1410_v62 }
 0x1a0   : > { %1413 = vmatpush1.bf16.msra.mxu1 %v1412_v4 }
 0x1a1   : > { %1415 = vmatprep.subr.bf16.mxu1 %v1414_v5 }
 0x1a4   : > { %1417 = vmatpush1.bf16.msra.mxu1 %v1416_v8 }
 0x1a7   : > { %964 = vmatmul.mubr.f32.vlgmr.msra.gmra.mrb[8].mxu1 %v1906_v28 }
 0x1a8   : > { %969 = vmatprep.mubr.f32.mxu1 %v1661_v63 }
 0x1ab   : > { %970 = vmatmul.mubr.f32.gmra.mrb[10].mxu1 %v616_v37  ;;  %v734_v37 = vrot.slane %v713_v13, %v733_v35 }
 0x25a   : > { %v811_v20 = vpop.f32.mrb[4].mxu1  ;;  %v888_v21 = vpop.f32.mrb[8].mxu0 }
 0x25b   : > { %v812_v22 = vadd.f32 %v811_v20, %v718_v16  ;;  %v889_v63 = vadd.f32 %v888_v21, %v726_v17  ;;  %v813_v23 = vpop.f32.mrb[5].mxu1  ;;  %v890_v24 = vpop.f32.mrb[9].mxu0 }
 0x25c   : > { %v814_v25 = vadd.f32 %v813_v23, %v722_v18  ;;  %v891_v26 = vadd.f32 %v890_v24, %v730_v19 }
 0x25d   : > { %976 = vst [vmem:[%s1920_s14] sm:$0xff] %v812_v22  ;;  %978 = vst [vmem:[%s1920_s14 + $0x10] sm:$0xff] %v889_v63 }
 0x25e   : > { %977 = vst [vmem:[%s1920_s14 + $0x8] sm:$0xff] %v814_v25  ;;  %979 = vst [vmem:[%s1920_s14 + $0x18] sm:$0xff] %v891_v26  ;;  %v817_v27 = vpop.f32.mrb[6].mxu1  ;;  %v894_v28 = vpop.f32.mrb[10].mxu0 }
 0x25f   : > { %v818_v29 = vadd.f32 %v817_v27, %v718_v16  ;;  %v895_v30 = vadd.f32 %v894_v28, %v726_v17  ;;  %v819_v31 = vpop.f32.mrb[7].mxu1  ;;  %v896_v32 = vpop.f32.mrb[11].mxu0 }
 0x260   : > { %v820_v33 = vadd.f32 %v819_v31, %v722_v18  ;;  %v897_v34 = vadd.f32 %v896_v32, %v730_v19 }
 0x261   : > { %982 = vst [vmem:[%s1920_s14 + $0x30] sm:$0xff] %v818_v29  ;;  %984 = vst [vmem:[%s1920_s14 + $0x40] sm:$0xff] %v895_v30 }
 0x262   : > { %983 = vst [vmem:[%s1920_s14 + $0x38] sm:$0xff] %v820_v33  ;;  %985 = vst [vmem:[%s1920_s14 + $0x48] sm:$0xff] %v897_v34 }
 0x27a   : > { %v965_v39 = vpop.f32.mrb[8].mxu1 }
 0x27b   : > { %v966_v40 = vadd.f32 %v965_v39, %v734_v37  ;;  %v967_v41 = vpop.f32.mrb[9].mxu1 }
 0x27c   : > { %v968_v42 = vadd.f32 %v967_v41, %v738_v38 }
 0x27d   : > { %980 = vst [vmem:[%s1920_s14 + $0x20] sm:$0xff] %v966_v40 }
 0x27e   : > { %981 = vst [vmem:[%s1920_s14 + $0x28] sm:$0xff] %v968_v42  ;;  %v971_v43 = vpop.f32.mrb[10].mxu1 }
 0x27f   : > { %v972_v44 = vadd.f32 %v971_v43, %v734_v37  ;;  %v973_v45 = vpop.f32.mrb[11].mxu1 }
 0x280   : > { %v974_v46 = vadd.f32 %v973_v45, %v738_v38 }
 0x281   : > { %986 = vst [vmem:[%s1920_s14 + $0x50] sm:$0xff] %v972_v44 }
 0x282   : > { %987 = vst [vmem:[%s1920_s14 + $0x58] sm:$0xff] %v974_v46 }
 0x283   : > { %1595 = shalt.err (!%p1592_p2)
}
 0x284   : > { %s1596_s8 = scalar_lea.hbm %s1937_s28, 1536  ;;  %s1600_s13 = scalar_lea.hbm %s1990_s5, 3072 }
 0x285   : > { %p1597_p13 = scmp.ne.s32.totalorder %s1937_s28, %s1596_s8  ;;  %p1601_p4 = scmp.lt.u32.totalorder %s1937_s28, %s1990_s5 }
 0x286   : > { %p1602_p7 = scmp.lt.u32.totalorder %s1600_s13, %s1596_s8  ;;  %p1604_p11 = scmp.lt.u32.totalorder %s1596_s8, %s1937_s28 }
 0x287   : > { %p1598_p6 = pnand %p1597_p13, %p2006_p0 }
 0x288   : > { %p1603_p8 = por %p1602_p7, %p1601_p4 }
 0x289   : > { %p1599_p10 = pneg %p1598_p6 }
 0x28a   : > { %p1605_p1 = por %p1604_p11, %p1603_p8 }
 0x28c   : > { %p1606_p3 = pnand %p1605_p1, %p1599_p10 }
 0x28e   : > { %1609 = shalt.err (!%p1606_p3)
}
 0x28f   : > { %s1663_s15 = smov 768   ;;  %s1664_s30 = smov 48  }
 0x290   : > { %1432 = dma.vmem_to_hbm [thread:$0]  (%p2006_p0), %s1939_s10, 1536, %s1937_s28, %s989_s22, %s1663_s15, %s1663_s15, %s1664_s30  }
 0x291 PF: > { %s1018_s7 = sand.u32 1, %s1640_s18   ;;  %p2007_p5 = scmp.ne.s32.totalorder %s1996_s25, 0 }
 0x292   : > { %p2008_p9 = scmp.ge.s32.totalorder %s1652_s21, 2  ;;  %s1019_s12 = scalar_lea.sflag [#allocation4], %s1018_s7 }
 0x294   : > { %p1446_p12 = pnand %p2008_p9, %p2007_p5 }
 0x296   : > { %1635 = dma.done.wait (!%p1446_p12), %s1019_s12, 1536  }
 0x297   : > { %1637 = vsyncadd (!%p1446_p12), %s1019_s12, 4294965760  ;;  %p19_p2 = scmp.ge.s32.totalorder %s1808_s16, 4   ;;  %s2009_s18 = smov %s1644_s19 }
 0x298   : > { %s2010_s19 = smov %s1648_s20  ;;  %s2011_s20 = smov %s1817_s27 }
 0x299   : > { %s2012_s21 = smov %s1808_s16  ;;  %21 = sbr.rel (!%p19_p2) target bundleno = 6 (0x6), region = 93 }
 0x2a0   :  { %1024 = vsyncpa [#allocation3], 1 }
 0x2a1   :  { %1026 = vsyncpa [#allocation3 + $0x1], 1 }
 0x2a2   :  { %1027 = vsyncpa [#allocation6], 1 }
 0x2a3   :  { %1028 = vsyncpa [#allocation4], 1 }
 0x2a4   :  { %1030 = vsyncpa [#allocation4 + $0x1], 1 }

</bundles_post_ra>
